<compile_context>
chip_gen: v6e
topology: v6e:2x2x1
jax: 0.10.0
libtpu: 0.0.40
codegen_flags: <defaults>
</compile_context>

<pallas_src>
import functools

import jax
import jax.numpy as jnp
from jax import lax
from jax.experimental import pallas as pl
from jax.experimental.pallas import tpu as pltpu

TILE_ROWS = 128     # row tile for the projection kernel
ONES_COLS = 8       # ones columns appended to h so the softmax denom rides the MXU
NEG_MASK = -1e9     # additive mask for non-edges (bf16-representable; exp underflows in f32)


def _round_up(x, m):
    return ((x + m - 1) // m) * m


# ----------------------------------------------------------------------------
# Kernel 1: fused (optional) pre-linear + GATConv projection + attention logits
#   t  = relu(x @ pre_w + pre_b)        (conv1 only: lin0 fused in)
#   h  = t @ W                          (bf16 MXU operands, f32 accumulation)
#   al = h @ S_att                      ([a_src | a_dst], att vectors folded block-diag)
# ----------------------------------------------------------------------------
def _project_kernel(*refs, pre_linear):
    if pre_linear:
        x_ref, pw_ref, pb_ref, w_ref, satt_ref, h_ref, al_ref = refs
    else:
        x_ref, w_ref, satt_ref, h_ref, al_ref = refs

    t = x_ref[...].astype(jnp.bfloat16)
    if pre_linear:
        t = jnp.dot(t, pw_ref[...].astype(jnp.bfloat16),
                    preferred_element_type=jnp.float32)
        t = jnp.maximum(t + pb_ref[...], 0.0).astype(jnp.bfloat16)     # ReLU fused
    h = jnp.dot(t, w_ref[...].astype(jnp.bfloat16),
                preferred_element_type=jnp.float32)
    hb = h.astype(jnp.bfloat16)
    al = jnp.dot(hb, satt_ref[...].astype(jnp.bfloat16),
                 preferred_element_type=jnp.float32)
    h_ref[...] = hb
    al_ref[...] = al


def gat_project(x, w, s_att, *, pre_w=None, pre_b=None):
    n = x.shape[0]
    hc = w.shape[1]
    two_h = s_att.shape[1]
    pre = pre_w is not None

    in_specs = [pl.BlockSpec((TILE_ROWS, x.shape[1]), lambda i: (i, 0))]
    args = [x]
    if pre:
        hid = pre_w.shape[1]
        in_specs += [pl.BlockSpec(pre_w.shape, lambda i: (0, 0)),
                     pl.BlockSpec((1, hid), lambda i: (0, 0))]
        args += [pre_w, pre_b.reshape(1, hid)]
    in_specs += [pl.BlockSpec(w.shape, lambda i: (0, 0)),
                 pl.BlockSpec(s_att.shape, lambda i: (0, 0))]
    args += [w, s_att]

    return pl.pallas_call(
        functools.partial(_project_kernel, pre_linear=pre),
        out_shape=(jax.ShapeDtypeStruct((n, hc), jnp.bfloat16),
                   jax.ShapeDtypeStruct((n, two_h), jnp.float32)),
        grid=(n // TILE_ROWS,),
        in_specs=in_specs,
        out_specs=(pl.BlockSpec((TILE_ROWS, hc), lambda i: (i, 0)),
                   pl.BlockSpec((TILE_ROWS, two_h), lambda i: (i, 0))),
        compiler_params=pltpu.CompilerParams(dimension_semantics=("parallel",)),
    )(*args)


# ----------------------------------------------------------------------------
# Kernel 2: tiled multi-head GAT attention (flash-style online softmax)
# ----------------------------------------------------------------------------
def _gat_attn_kernel(occ_ref, adst_ref, asrc_ref, h_ref, mask_ref, bias_ref, *rest,
                     num_heads, channels, activation, post_linear):
    if post_linear:
        pw_ref, pb_ref, o_ref, m_sc, acc_sc = rest
    else:
        o_ref, m_sc, acc_sc = rest

    i = pl.program_id(0)
    j = pl.program_id(1)

    @pl.when(j == 0)
    def _init():
        m_sc[...] = jnp.full(m_sc.shape, -1e30, jnp.float32)
        acc_sc[...] = jnp.zeros(acc_sc.shape, jnp.float32)

    @pl.when(occ_ref[i, j] > 0)                     # skip fully-masked (i, j) tiles
    def _compute():
        mask = mask_ref[...].astype(jnp.float32)    # additive 0 / -1e9, cast once per tile

        def head_body(hh):
            s = adst_ref[hh] + asrc_ref[hh]         # [ti,1] + [1,tj] -> [ti,tj]
            s = jnp.maximum(s, 0.2 * s)             # LeakyReLU(0.2) (slope < 1)
            s = s + mask
            m_prev = m_sc[hh]
            m_new = jnp.maximum(m_prev, jnp.max(s, axis=-1, keepdims=True))
            scale = jnp.exp(m_prev - m_new)
            p = jnp.exp(s - m_new).astype(jnp.bfloat16)
            # h carries ONES_COLS trailing ones columns: a single bf16 MXU matmul
            # gives both the weighted aggregation and the softmax denominator.
            acc_sc[hh] = scale * acc_sc[hh] + jnp.dot(
                p, h_ref[hh], preferred_element_type=jnp.float32)
            m_sc[hh] = m_new

        if num_heads == 1:
            head_body(0)
        else:
            # fori_loop bounds per-head vreg live ranges (8-way unroll could spill).
            def _loop_body(hh, carry):
                head_body(hh)
                return carry
            lax.fori_loop(0, num_heads, _loop_body, 0)

    @pl.when(j == pl.num_programs(1) - 1)
    def _finalize():
        outs = []
        for hh in range(num_heads):                 # static: runs once per i-tile
            acc = acc_sc[hh]
            denom = jnp.maximum(acc[:, channels:channels + 1], 1e-30)
            outs.append(acc[:, :channels] * pl.reciprocal(denom, approx=True))
        o = outs[0] if num_heads == 1 else jnp.concatenate(outs, axis=-1)
        o = o + bias_ref[...]
        if activation == "elu":
            o = jnp.where(o > 0, o, jnp.exp(jnp.minimum(o, 0.0)) - 1.0)
        if post_linear:                             # lin1 fused into conv2's finalize
            o = jnp.dot(o.astype(jnp.bfloat16), pw_ref[...].astype(jnp.bfloat16),
                        preferred_element_type=jnp.float32) + pb_ref[...]
        o_ref[...] = o.astype(o_ref.dtype)


def gat_attention(occ, a_dst, a_src, h_aug, mask, bias2, *, tile_i, tile_j,
                  activation, out_dtype, post_w=None, post_b=None):
    num_heads, n, c_aug = h_aug.shape
    channels = c_aug - ONES_COLS
    n_i, n_j = n // tile_i, n // tile_j
    concat_width = bias2.shape[1]
    post = post_w is not None
    out_width = post_w.shape[1] if post else concat_width

    in_specs = [
        pl.BlockSpec((num_heads, tile_i, 1), lambda i, j, occ_r: (0, i, 0)),      # a_dst
        pl.BlockSpec((num_heads, 1, tile_j), lambda i, j, occ_r: (0, 0, j)),      # a_src
        pl.BlockSpec((num_heads, tile_j, c_aug), lambda i, j, occ_r: (0, j, 0)),  # h (+ones)
        pl.BlockSpec((tile_i, tile_j), lambda i, j, occ_r: (i, j)),               # additive mask
        pl.BlockSpec((1, concat_width), lambda i, j, occ_r: (0, 0)),              # conv bias
    ]
    args = [a_dst, a_src, h_aug, mask, bias2]
    if post:
        in_specs += [pl.BlockSpec(post_w.shape, lambda i, j, occ_r: (0, 0)),
                     pl.BlockSpec((1, out_width), lambda i, j, occ_r: (0, 0))]
        args += [post_w, post_b.reshape(1, out_width)]

    return pl.pallas_call(
        functools.partial(_gat_attn_kernel, num_heads=num_heads, channels=channels,
                          activation=activation, post_linear=post),
        out_shape=jax.ShapeDtypeStruct((n, out_width), out_dtype),
        grid_spec=pltpu.PrefetchScalarGridSpec(
            num_scalar_prefetch=1,                  # tile-occupancy table -> SMEM
            grid=(n_i, n_j),
            in_specs=in_specs,
            out_specs=pl.BlockSpec((tile_i, out_width), lambda i, j, occ_r: (i, 0)),
            scratch_shapes=[
                pltpu.VMEM((num_heads, tile_i, 1), jnp.float32),       # running max m
                pltpu.VMEM((num_heads, tile_i, c_aug), jnp.float32),   # acc (+ denom cols)
            ]),
        compiler_params=pltpu.CompilerParams(
            dimension_semantics=("parallel", "arbitrary")),
    )(occ, *args)


# ----------------------------------------------------------------------------
# Glue: one GATConv layer + full GAT forward
# ----------------------------------------------------------------------------
def _fold_att(att_src, att_dst):
    """Block-diagonal [H*C, 2H] matrix so that h_flat @ S = [a_src | a_dst]."""
    num_heads, c = att_src.shape
    rows = jnp.arange(num_heads * c)
    heads = rows // c
    s = jnp.zeros((num_heads * c, 2 * num_heads), jnp.float32)
    s = s.at[rows, heads].set(att_src.reshape(-1))
    s = s.at[rows, num_heads + heads].set(att_dst.reshape(-1))
    return s


def gat_conv(x, mask, occ, p, *, tile_i, tile_j, concat, activation=None,
             out_dtype=jnp.float32, pre_w=None, pre_b=None, post_w=None, post_b=None):
    n = x.shape[0]                                   # already padded to a tile multiple
    num_heads, c = p["att_src"].shape
    assert concat or num_heads == 1, "head-mean (concat=False, H>1) not needed here"
    s_att = _fold_att(p["att_src"], p["att_dst"])

    h_flat, al = gat_project(x, p["w"], s_att, pre_w=pre_w, pre_b=pre_b)

    # Wrapper-side layout plumbing (cheap, O(N*H*C)): heads-major h with ONES_COLS
    # appended so the attention kernel's matmul also yields the softmax denominator.
    h3 = h_flat.reshape(n, num_heads, c).transpose(1, 0, 2)                   # [H, N, C]
    h_aug = jnp.concatenate(
        [h3, jnp.ones((num_heads, n, ONES_COLS), jnp.bfloat16)], axis=-1)     # [H, N, C+8]
    a_src = al[:, :num_heads].T.reshape(num_heads, 1, n)                      # [H, 1, N]
    a_dst = al[:, num_heads:].T.reshape(num_heads, n, 1)                      # [H, N, 1]

    bias = p["bias"].astype(jnp.float32)
    bias2 = bias.reshape(1, num_heads * c) if concat else bias.reshape(1, c)

    return gat_attention(occ, a_dst, a_src, h_aug, mask, bias2,
                         tile_i=tile_i, tile_j=tile_j, activation=activation,
                         out_dtype=out_dtype, post_w=post_w, post_b=post_b)


def gat_forward(x, edge_index, params):
    """Eval-mode forward of the reference GAT (all dropout layers are identity)."""
    n = x.shape[0]
    n_pad = _round_up(n, TILE_ROWS)

    # Attention tiles: large j (source) tile amortizes online-softmax rescale and
    # per-grid-step overhead; i (target / "parallel") axis kept >= 2 steps when
    # possible so v7x megacore can shard it.
    tile_j = max(t for t in (512, 256, 128) if n_pad % t == 0)
    tile_i = 256 if (n_pad % 256 == 0 and n_pad // 256 >= 2) else 128

    x_p = jnp.pad(x, ((0, n_pad - n), (0, 0)))

    # Dense additive mask + tile-occupancy table shared by both GATConv layers.
    # remove_self_loops + add_self_loops (PyG GATConv default); padded rows also get a
    # self loop so every softmax row has >= 1 valid entry (no 0/0).
    # TODO(synk): densification dedups parallel (duplicate) edges; PyG softmaxes each
    #             parallel edge separately on multigraphs.
    # TODO(synk): for very large sparse graphs replace the dense O(N^2) mask with CSR
    #             neighbor gathers; on v5e an int8 / bit-packed adjacency halves the
    #             only O(N^2) HBM stream.
    src, dst = edge_index[0], edge_index[1]
    keep = (src != dst).astype(jnp.float32)
    adj = jnp.zeros((n_pad, n_pad), jnp.float32).at[dst, src].max(keep)
    diag = jnp.arange(n_pad)
    adj = adj.at[diag, diag].max(jnp.ones((n_pad,), jnp.float32))
    mask = jnp.where(adj > 0, 0.0, NEG_MASK).astype(jnp.bfloat16)
    occ = (adj.reshape(n_pad // tile_i, tile_i, n_pad // tile_j, tile_j)
              .max(axis=(1, 3)) > 0).astype(jnp.int32)

    # conv1: lin0+ReLU fused into the projection, F.elu fused into the finalize,
    # lane-dense bf16 [N, H*C] output that feeds conv2's projection directly.
    h = gat_conv(x_p, mask, occ, params["conv1"], tile_i=tile_i, tile_j=tile_j,
                 concat=True, activation="elu", out_dtype=jnp.bfloat16,
                 pre_w=params["lin0_w"], pre_b=params["lin0_b"])
    # conv2: heads=1 / concat=False, lin1 fused into the finalize.
    out = gat_conv(h, mask, occ, params["conv2"], tile_i=tile_i, tile_j=tile_j,
                   concat=False, activation=None, out_dtype=jnp.float32,
                   post_w=params["lin1_w"], post_b=params["lin1_b"])
    return out[:n]


# ----------------------------------------------------------------------------
# Parameter init (PyTorch-module-shaped, deterministic)
# ----------------------------------------------------------------------------
def _glorot(key, shape, fan_in, fan_out):
    lim = (6.0 / (fan_in + fan_out)) ** 0.5
    return jax.random.uniform(key, shape, jnp.float32, -lim, lim)


def init_params(key, in_channels, hidden, out_channels, heads):
    k = jax.random.split(key, 8)
    return {
        "lin0_w": _glorot(k[0], (in_channels, hidden), in_channels, hidden),
        "lin0_b": jnp.zeros((hidden,), jnp.float32),
        "conv1": dict(
            w=_glorot(k[1], (hidden, heads * hidden), hidden, heads * hidden),
            att_src=_glorot(k[2], (heads, hidden), 1, hidden),
            att_dst=_glorot(k[3], (heads, hidden), 1, hidden),
            bias=jnp.zeros((heads * hidden,), jnp.float32)),
        "conv2": dict(
            w=_glorot(k[4], (heads * hidden, hidden), heads * hidden, hidden),
            att_src=_glorot(k[5], (1, hidden), 1, hidden),
            att_dst=_glorot(k[6], (1, hidden), 1, hidden),
            bias=jnp.zeros((hidden,), jnp.float32)),
        "lin1_w": _glorot(k[7], (hidden, out_channels), hidden, out_channels),
        "lin1_b": jnp.zeros((out_channels,), jnp.float32),
    }


if __name__ == "__main__":
    key = jax.random.PRNGKey(0)
    kx, ke, kp = jax.random.split(key, 3)

    num_nodes, num_edges = 200, 800
    in_channels, hidden, out_channels, heads = 16, 32, 8, 8

    x = jax.random.normal(kx, (num_nodes, in_channels), jnp.float32)
    edge_index = jax.random.randint(ke, (2, num_edges), 0, num_nodes, dtype=jnp.int32)
    params = init_params(kp, in_channels, hidden, out_channels, heads)

    out = gat_forward(x, edge_index, params)
    out = jax.block_until_ready(out)
    assert out.shape == (num_nodes, out_channels)
    assert out.dtype == jnp.float32
    assert bool(jnp.all(jnp.isfinite(out)))
    print("KERNEL_OK")
</pallas_src>

<mosaic_0001>
module attributes {stable_mosaic.version = 11 : i64} {
  func.func @_project_kernel(%arg0: i32, %arg1: memref<128x16xf32, #tpu.memory_space<vmem>>, %arg2: memref<16x32xf32, #tpu.memory_space<vmem>>, %arg3: memref<1x32xf32, #tpu.memory_space<vmem>>, %arg4: memref<32x256xf32, #tpu.memory_space<vmem>>, %arg5: memref<256x16xf32, #tpu.memory_space<vmem>>, %arg6: memref<128x256xbf16, #tpu.memory_space<vmem>>, %arg7: memref<128x16xf32, #tpu.memory_space<vmem>>) attributes {dimension_semantics = [#tpu.dimension_semantics<parallel>], iteration_bounds = array<i64: 2>, scalar_prefetch = 0 : i64, scratch_operands = 0 : i64, tpu.core_type = #tpu.core_type<tc>, window_params = [{transform_indices = @transform_0, window_bounds = array<i64: 128, 16>}, {pipeline_mode = #tpu.pipeline_mode<synchronous>, transform_indices = @transform_1, window_bounds = array<i64: 16, 32>}, {pipeline_mode = #tpu.pipeline_mode<synchronous>, transform_indices = @transform_2, window_bounds = array<i64: 1, 32>}, {pipeline_mode = #tpu.pipeline_mode<synchronous>, transform_indices = @transform_3, window_bounds = array<i64: 32, 256>}, {pipeline_mode = #tpu.pipeline_mode<synchronous>, transform_indices = @transform_4, window_bounds = array<i64: 256, 16>}, {transform_indices = @transform_5, window_bounds = array<i64: 128, 256>}, {transform_indices = @transform_6, window_bounds = array<i64: 128, 16>}]} {
    %c0 = arith.constant 0 : index
    %c0_0 = arith.constant 0 : index
    %0 = vector.load %arg1[%c0, %c0_0] : memref<128x16xf32, #tpu.memory_space<vmem>>, vector<128x16xf32>
    %1 = arith.truncf %0 : vector<128x16xf32> to vector<128x16xbf16>
    %c0_1 = arith.constant 0 : index
    %c0_2 = arith.constant 0 : index
    %2 = vector.load %arg2[%c0_1, %c0_2] : memref<16x32xf32, #tpu.memory_space<vmem>>, vector<16x32xf32>
    %3 = arith.truncf %2 : vector<16x32xf32> to vector<16x32xbf16>
    %cst = arith.constant dense<0.000000e+00> : vector<128x32xf32>
    %4 = tpu.matmul %1, %3, %cst {dimension_numbers = #tpu.dot_dimension_numbers<[1], [0], [0], [1], [0, 0, 1, 1], [], []>} : vector<128x16xbf16>, vector<16x32xbf16>, vector<128x32xf32> -> vector<128x32xf32>
    %c0_3 = arith.constant 0 : index
    %c0_4 = arith.constant 0 : index
    %5 = vector.load %arg3[%c0_3, %c0_4] : memref<1x32xf32, #tpu.memory_space<vmem>>, vector<1x32xf32>
    %6 = vector.broadcast %5 : vector<1x32xf32> to vector<128x32xf32>
    %7 = arith.addf %4, %6 : vector<128x32xf32>
    %cst_5 = arith.constant 0.000000e+00 : f32
    %8 = vector.broadcast %cst_5 : f32 to vector<128x32xf32>
    %9 = arith.maximumf %7, %8 : vector<128x32xf32>
    %10 = arith.truncf %9 : vector<128x32xf32> to vector<128x32xbf16>
    %c0_6 = arith.constant 0 : index
    %c0_7 = arith.constant 0 : index
    %11 = vector.load %arg4[%c0_6, %c0_7] : memref<32x256xf32, #tpu.memory_space<vmem>>, vector<32x256xf32>
    %12 = arith.truncf %11 : vector<32x256xf32> to vector<32x256xbf16>
    %cst_8 = arith.constant dense<0.000000e+00> : vector<128x256xf32>
    %13 = tpu.matmul %10, %12, %cst_8 {dimension_numbers = #tpu.dot_dimension_numbers<[1], [0], [0], [1], [0, 0, 1, 1], [], []>} : vector<128x32xbf16>, vector<32x256xbf16>, vector<128x256xf32> -> vector<128x256xf32>
    %14 = arith.truncf %13 : vector<128x256xf32> to vector<128x256xbf16>
    %c0_9 = arith.constant 0 : index
    %c0_10 = arith.constant 0 : index
    %15 = vector.load %arg5[%c0_9, %c0_10] : memref<256x16xf32, #tpu.memory_space<vmem>>, vector<256x16xf32>
    %16 = arith.truncf %15 : vector<256x16xf32> to vector<256x16xbf16>
    %cst_11 = arith.constant dense<0.000000e+00> : vector<128x16xf32>
    %17 = tpu.matmul %14, %16, %cst_11 {dimension_numbers = #tpu.dot_dimension_numbers<[1], [0], [0], [1], [0, 0, 1, 1], [], []>} : vector<128x256xbf16>, vector<256x16xbf16>, vector<128x16xf32> -> vector<128x16xf32>
    %c0_12 = arith.constant 0 : index
    %c0_13 = arith.constant 0 : index
    %18 = vector.load %arg6[%c0_12, %c0_13] : memref<128x256xbf16, #tpu.memory_space<vmem>>, vector<128x256xbf16>
    tpu.vector_store %arg6[%c0_12, %c0_13], %14 {strides = array<i32>} : memref<128x256xbf16, #tpu.memory_space<vmem>>, vector<128x256xbf16>,
    %c0_14 = arith.constant 0 : index
    %c0_15 = arith.constant 0 : index
    %19 = vector.load %arg7[%c0_14, %c0_15] : memref<128x16xf32, #tpu.memory_space<vmem>>, vector<128x16xf32>
    tpu.vector_store %arg7[%c0_14, %c0_15], %17 {strides = array<i32>} : memref<128x16xf32, #tpu.memory_space<vmem>>, vector<128x16xf32>,
    return
  }
  func.func @transform_0(%arg0: i32) -> (i32, i32) {
    %c0_i32 = arith.constant 0 : i32
    %c0_i32_0 = arith.constant 0 : i32
    return %arg0, %c0_i32 : i32, i32
  }
  func.func @transform_1(%arg0: i32) -> (i32, i32) {
    %c0_i32 = arith.constant 0 : i32
    %c0_i32_0 = arith.constant 0 : i32
    %c0_i32_1 = arith.constant 0 : i32
    return %c0_i32, %c0_i32_0 : i32, i32
  }
  func.func @transform_2(%arg0: i32) -> (i32, i32) {
    %c0_i32 = arith.constant 0 : i32
    %c0_i32_0 = arith.constant 0 : i32
    %c0_i32_1 = arith.constant 0 : i32
    return %c0_i32, %c0_i32_0 : i32, i32
  }
  func.func @transform_3(%arg0: i32) -> (i32, i32) {
    %c0_i32 = arith.constant 0 : i32
    %c0_i32_0 = arith.constant 0 : i32
    %c0_i32_1 = arith.constant 0 : i32
    return %c0_i32, %c0_i32_0 : i32, i32
  }
  func.func @transform_4(%arg0: i32) -> (i32, i32) {
    %c0_i32 = arith.constant 0 : i32
    %c0_i32_0 = arith.constant 0 : i32
    %c0_i32_1 = arith.constant 0 : i32
    return %c0_i32, %c0_i32_0 : i32, i32
  }
  func.func @transform_5(%arg0: i32) -> (i32, i32) {
    %c0_i32 = arith.constant 0 : i32
    %c0_i32_0 = arith.constant 0 : i32
    return %arg0, %c0_i32 : i32, i32
  }
  func.func @transform_6(%arg0: i32) -> (i32, i32) {
    %c0_i32 = arith.constant 0 : i32
    %c0_i32_0 = arith.constant 0 : i32
    return %arg0, %c0_i32 : i32, i32
  }
}

</mosaic_0001>

<bundles_post_ra>
// kernel: tpu_custom_call.1
= control target key start
LH: loop header
LB: loop body
LE: loop exit
PB: predicated region body
PF: predicated region fallthrough
CT: control target
= control target key end

     0   :  { %12 = vsyncpa [#allocation3], 0  ;;  %s1655_s0 = inlined_call_operand.vmem [shape: f32[256,16], index: 0, kind: input, shape index: {}]   ;;  %s1656_s1 = inlined_call_operand.vmem [shape: f32[16,32], index: 1, kind: input, shape index: {}]   ;;  %s1657_s2 = inlined_call_operand.vmem [shape: f32[1,32], index: 2, kind: input, shape index: {}]   ;;  %s1658_s3 = inlined_call_operand.vmem [shape: f32[32,256], index: 3, kind: input, shape index: {}]   ;;  %s1659_s4 = inlined_call_operand.vmem [shape: f32[256,16], index: 4, kind: input, shape index: {}]   ;;  %s1660_s5 = inlined_call_operand.hbm [shape: bf16[256,256], index: 5, kind: output, shape index: {0}]   ;;  %s1661_s6 = inlined_call_operand.vmem [shape: f32[256,16], index: 6, kind: output, shape index: {1}]  }
   0x1   :  { %14 = vsyncpa [#allocation3 + $0x1], 0  ;;  %s1298_s21 = smov 0   ;;  %s1300_s22 = smov 0  }
   0x2   :  { %s1302_s23 = smov 0   ;;  %s1304_s24 = smov 0  }
   0x3 LB: > { %s1319_s25 = sadd.s32 4294967295, %s1257_s24   ;;  %s982_s26 = sadd.s32 4294967294, %s1257_s24   ;;  %s1257_s24 = sphi %s1304_s24, %s1667_s24   ;;  %s1253_s23 = sphi %s1302_s23, %s1666_s23   ;;  %s1249_s22 = sphi %s1300_s22, %s1665_s22   ;;  %s1245_s21 = sphi %s1298_s21, %s1664_s21  }
   0x4   : > { %s1323_s27 = sadd.s32 1, %s1257_s24   ;;  %s137_s28 = sadd.s32 1, %s1253_s23 }
   0x5   : > { %s134_s29 = ssub.s32 %s1257_s24, %s1323_s27  ;;  %p147_p0 = scmp.ne.s32.totalorder %s1253_s23, %s1249_s22 }
   0x6   : > { %p135_p1 = scmp.eq.s32.totalorder %s134_s29, 0  ;;  %p148_p2 = scmp.eq.s32.totalorder %s1319_s25, 1 }
   0x7   : > { %p153_p3 = scmp.ne.s32.totalorder %s1249_s22, %s1245_s21  ;;  %p154_p4 = scmp.eq.s32.totalorder %s982_s26, 1 }
   0x8   : > { %s1334_s30 = scalar_select %p135_p1, %s1253_s23, %s137_s28  }
   0x9   : > { %p1336_p5 = por %p148_p2, %p147_p0  ;;  %p1340_p6 = por %p154_p4, %p153_p3 }
   0xa   : > { %p985_p7 = scmp.ge.s32.totalorder %s1257_s24, 1  ;;  %p219_p8 = scmp.lt.s32.totalorder %s1257_s24, 3 }
   0xc   : > { %p220_p9 = pnand %p985_p7, %p219_p8 }
   0xd   : > { %s987_s13 = sshll.u32 (!%p220_p9), %s1319_s25, 4  ;;  %s244_s28 = sand.u32 (!%p220_p9), 1, %s1249_s22  }
   0xe   : > { %223 = sbr.rel (%p220_p9) target bundleno = 691 (0x2b3), region = 40  ;;  %p255_p10 = scmp.lt.s32.totalorder (!%p220_p9), %s987_s13, 31 }
   0xf   : > { %s986_s29 = sshll.u32 (!%p220_p9), %s244_s28, 7  ;;  %s1047_s10 = sshll.u32 (!%p220_p9), %s1319_s25, 11 }
  0x10   : > { %s1547_s9 = scalar_lea.vmem (!%p220_p9), [#allocation2], %s986_s29  ;;  %s1570_s16 = scalar_lea.hbm (!%p220_p9), %s1660_s5, %s1047_s10 }
  0x11   : > { %s891_s11 = sshll.u32 (!%p220_p9), %s1547_s9, 4  ;;  %s1260_s25 = smov (!%p220_p9), [#allocation2]   ;;  %s1572_s11 = int_to_ptr.vmem [resolvable:$true] %s891_s11 }
  0x12   : > { %s1197_s18 = scalar_lea.vmem (!%p220_p9), %s1572_s11, 2048  ;;  %s1201_s19 = sshll.u32 (!%p220_p9), %s1260_s25, 4  ;;  %s1202_s19 = int_to_ptr.vmem [resolvable:$false] %s1201_s19 }
  0x13   : > { %v292_v0 = vld [vmem:[%s1656_s1] sm:$0xff]  ;;  %v293_v1 = vld [vmem:[%s1656_s1 + $0x8] sm:$0xff]  ;;  %s1669_s13 = smov (!%p255_p10, %s987_s13), 31  ;;  %vm302_vm0 = vcmask 130048   ;;  %v455_v28 = vld [vmem:[%s1658_s3 + $0x38] sm:$0xff]  ;;  %v1259_v39 = vmov 0   ;;  %p1198_p11 = scmp.ne.s32.totalorder %s1572_s11, %s1197_s18 }
  0x14   : > { %v294_v2 = vpack.c.bf16 %v293_v1, %v292_v0  ;;  %s988_s14 = sshll.u32 %s1669_s13, 3  ;;  %v453_v27 = vld [vmem:[%s1658_s3 + $0x28] sm:$0xff]  ;;  %v452_v30 = vld [vmem:[%s1658_s3 + $0x20] sm:$0xff]  ;;  %v454_v31 = vld [vmem:[%s1658_s3 + $0x30] sm:$0xff]  ;;  %517 = vmatprep.mubr.bf16.mxu1 %v1259_v39  ;;  %vm460_vm1 = vcmask 261120   ;;  %s1203_s20 = scalar_lea.vmem %s1202_s19, 4096 }
  0x15   : > { %s1361_s17 = scalar_lea.vmem %s1655_s0, %s988_s14  ;;  %v459_v29 = vpack.c.bf16 %v455_v28, %v453_v27  ;;  %v458_v32 = vpack.c.bf16 %v454_v31, %v452_v30  ;;  %v449_v33 = vld [vmem:[%s1658_s3 + $0x8] sm:$0xff]  ;;  %v451_v34 = vld [vmem:[%s1658_s3 + $0x18] sm:$0xff]  ;;  %v448_v36 = vld [vmem:[%s1658_s3] sm:$0xff]  ;;  %p1199_p12 = pnand %p1198_p11, %p1336_p5 }
  0x16   : > { %1121 = vmatprep.subr.bf16.mxu0 %v294_v2  ;;  %v268_v3 = vld [vmem:[%s1361_s17] sm:$0xff]  ;;  %v269_v4 = vld [vmem:[%s1361_s17 + $0x8] sm:$0xff]  ;;  %v270_v5 = vld [vmem:[%s1361_s17 + $0x10] sm:$0xff]  ;;  %v457_v35 = vpack.c.bf16 %v451_v34, %v449_v33  ;;  %p1204_p0 = scmp.lt.s32.totalorder %s1572_s11, %s1202_s19  ;;  %p1205_p1 = scmp.lt.s32.totalorder %s1203_s20, %s1197_s18 }
  0x17   : > { %1122 = vmatpush3.bf16.msra.mxu0 %v294_v2  ;;  %v284_v6 = vpack.c.bf16 %v269_v4, %v268_v3  ;;  %v271_v7 = vld [vmem:[%s1361_s17 + $0x18] sm:$0xff]  ;;  %v272_v8 = vld [vmem:[%s1361_s17 + $0x20] sm:$0xff]  ;;  %v273_v9 = vld [vmem:[%s1361_s17 + $0x28] sm:$0xff]  ;;  %497 = vmatprep.subr.bf16.mxu1 %v459_v29  ;;  %p1200_p13 = pneg %p1199_p12 }
  0x18   : > { %v285_v10 = vpack.c.bf16 %v271_v7, %v270_v5  ;;  %v286_v11 = vpack.c.bf16 %v273_v9, %v272_v8  ;;  %v274_v12 = vld [vmem:[%s1361_s17 + $0x30] sm:$0xff]  ;;  %v275_v13 = vld [vmem:[%s1361_s17 + $0x38] sm:$0xff]  ;;  %v276_v14 = vld [vmem:[%s1361_s17 + $0x40] sm:$0xff]  ;;  %498 = vmatpush1.bf16.msra.mxu1 %v458_v32  ;;  %p1206_p2 = por %p1205_p1, %p1204_p0 }
  0x19   : > { %1123 = vmatprep.mubr.msk.bf16.mxu0 %vm302_vm0, %v284_v6  ;;  %v277_v15 = vld [vmem:[%s1361_s17 + $0x48] sm:$0xff]  ;;  %v287_v16 = vpack.c.bf16 %v275_v13, %v274_v12  ;;  %v278_v18 = vld [vmem:[%s1361_s17 + $0x50] sm:$0xff]  ;;  %v279_v19 = vld [vmem:[%s1361_s17 + $0x58] sm:$0xff]  ;;  %499 = vmatprep.subr.bf16.mxu1 %v457_v35 }
  0x1a   : > { %1124 = vmatmul.mubr.msk.bf16.vlgmr.msra.gmra.mxu0 %vm302_vm0, %v285_v10  ;;  %v288_v17 = vpack.c.bf16 %v277_v15, %v276_v14  ;;  %v280_v20 = vld [vmem:[%s1361_s17 + $0x60] sm:$0xff]  ;;  %v281_v21 = vld [vmem:[%s1361_s17 + $0x68] sm:$0xff]  ;;  %v289_v22 = vpack.c.bf16 %v279_v19, %v278_v18  ;;  %v282_v24 = vld [vmem:[%s1361_s17 + $0x70] sm:$0xff]  ;;  %p1207_p3 = pnand %p1206_p2, %p1200_p13 }
  0x1b   : > { %1127 = vmatprep.mubr.msk.bf16.mxu0 %vm302_vm0, %v286_v11  ;;  %v290_v23 = vpack.c.bf16 %v281_v21, %v280_v20  ;;  %v283_v25 = vld [vmem:[%s1361_s17 + $0x78] sm:$0xff]  ;;  %v450_v37 = vld [vmem:[%s1658_s3 + $0x10] sm:$0xff]  ;;  %v642_v45 = vld [vmem:[%s1659_s4 + $0xe0] sm:$0xff]  ;;  %s1576_s17 = scalar_lea.sflag [#allocation3], %s244_s28 }
  0x1c   : > { %v291_v26 = vpack.c.bf16 %v283_v25, %v282_v24  ;;  %v456_v38 = vpack.c.bf16 %v450_v37, %v448_v36  ;;  %v644_v40 = vld [vmem:[%s1659_s4 + $0xf0] sm:$0xff]  ;;  %v645_v41 = vld [vmem:[%s1659_s4 + $0xf8] sm:$0xff]  ;;  %v643_v46 = vld [vmem:[%s1659_s4 + $0xe8] sm:$0xff] }
  0x1d   : > { %v628_v42 = vld [vmem:[%s1659_s4 + $0x70] sm:$0xff]  ;;  %v661_v43 = vpack.c.bf16 %v645_v41, %v644_v40  ;;  %v629_v44 = vld [vmem:[%s1659_s4 + $0x78] sm:$0xff]  ;;  %v660_v48 = vpack.c.bf16 %v643_v46, %v642_v45  ;;  %v626_v49 = vld [vmem:[%s1659_s4 + $0x60] sm:$0xff] }
  0x1e   : > { %500 = vmatpush1.bf16.msra.mxu1 %v456_v38  ;;  %v653_v47 = vpack.c.bf16 %v629_v44, %v628_v42  ;;  %v627_v50 = vld [vmem:[%s1659_s4 + $0x68] sm:$0xff]  ;;  %v640_v51 = vld [vmem:[%s1659_s4 + $0xd0] sm:$0xff]  ;;  %v641_v52 = vld [vmem:[%s1659_s4 + $0xd8] sm:$0xff] }
  0x1f   : > { %1057 = vmatprep.subr.bf16.mxu0 %v661_v43  ;;  %1139 = vmatprep.subr.bf16.mxu1 %v661_v43  ;;  %v652_v53 = vpack.c.bf16 %v627_v50, %v626_v49  ;;  %v659_v54 = vpack.c.bf16 %v641_v52, %v640_v51  ;;  %v624_v55 = vld [vmem:[%s1659_s4 + $0x50] sm:$0xff]  ;;  %v625_v56 = vld [vmem:[%s1659_s4 + $0x58] sm:$0xff]  ;;  %v638_v57 = vld [vmem:[%s1659_s4 + $0xc0] sm:$0xff] }
  0x20   : > { %1058 = vmatpush3.bf16.msra.mxu0 %v653_v47  ;;  %v639_v58 = vld [vmem:[%s1659_s4 + $0xc8] sm:$0xff]  ;;  %v651_v59 = vpack.c.bf16 %v625_v56, %v624_v55  ;;  %v622_v61 = vld [vmem:[%s1659_s4 + $0x40] sm:$0xff]  ;;  %v636_v63 = vld [vmem:[%s1659_s4 + $0xb0] sm:$0xff] }
  0x21   : > { %1059 = vmatprep.subr.bf16.mxu0 %v660_v48  ;;  %v658_v60 = vpack.c.bf16 %v639_v58, %v638_v57  ;;  %v623_v62 = vld [vmem:[%s1659_s4 + $0x48] sm:$0xff]  ;;  %v637_v0 = vld [vmem:[%s1659_s4 + $0xb8] sm:$0xff]  ;;  %v620_v3 = vld [vmem:[%s1659_s4 + $0x30] sm:$0xff] }
  0x22   : > { %1128 = vmatmul.mubr.msk.bf16.gmra.mxu0 %vm302_vm0, %v287_v16  ;;  %v650_v1 = vpack.c.bf16 %v623_v62, %v622_v61  ;;  %v657_v2 = vpack.c.bf16 %v637_v0, %v636_v63  ;;  %v621_v4 = vld [vmem:[%s1659_s4 + $0x38] sm:$0xff]  ;;  %v634_v5 = vld [vmem:[%s1659_s4 + $0xa0] sm:$0xff]  ;;  %v635_v6 = vld [vmem:[%s1659_s4 + $0xa8] sm:$0xff] }
  0x23   : > { %1131 = vmatprep.mubr.msk.bf16.mxu0 %vm302_vm0, %v288_v17  ;;  %v649_v7 = vpack.c.bf16 %v621_v4, %v620_v3  ;;  %v656_v8 = vpack.c.bf16 %v635_v6, %v634_v5  ;;  %v618_v9 = vld [vmem:[%s1659_s4 + $0x20] sm:$0xff]  ;;  %v619_v10 = vld [vmem:[%s1659_s4 + $0x28] sm:$0xff]  ;;  %v632_v6 = vld [vmem:[%s1659_s4 + $0x90] sm:$0xff] }
  0x24   : > { %1060 = vmatpush3.bf16.msra.mxu0 %v652_v53  ;;  %v648_v11 = vpack.c.bf16 %v619_v10, %v618_v9  ;;  %v1487_v14 = vld [vmem:[%s1657_s2] ss:$0 sm:$0xff]  ;;  %v616_v9 = vld [vmem:[%s1659_s4 + $0x10] sm:$0xff] }
  0x25   : > { %1061 = vmatprep.subr.bf16.mxu0 %v659_v54 }
  0x28   : > { %1062 = vmatpush3.bf16.msra.mxu0 %v651_v59 }
  0x29   : > { %1063 = vmatprep.subr.bf16.mxu0 %v658_v60 }
  0x2a   : > { %1132 = vmatmul.mubr.msk.bf16.gmra.mxu0 %vm302_vm0, %v289_v22 }
  0x2b   : > { %1135 = vmatprep.mubr.msk.bf16.mxu0 %vm302_vm0, %v290_v23 }
  0x2c   : > { %1064 = vmatpush3.bf16.msra.mxu0 %v650_v1 }
  0x2d   : > { %1065 = vmatprep.subr.bf16.mxu0 %v657_v2 }
  0x30   : > { %1066 = vmatpush3.bf16.msra.mxu0 %v649_v7 }
  0x31   : > { %1067 = vmatprep.subr.bf16.mxu0 %v656_v8 }
  0x32   : > { %1136 = vmatmul.mubr.msk.bf16.gmra.mxu0 %vm302_vm0, %v291_v26 }
  0x34   : > { %1068 = vmatpush3.bf16.msra.mxu0 %v648_v11 }
  0xda   : > { %v1125_v12 = vpop.f32.mrf.mxu0 }
  0xdb   : > { %v370_v26 = vadd.f32 %v1125_v12, %v1487_v14  ;;  %v631_v12 = vld [vmem:[%s1659_s4 + $0x88] sm:$0xff] }
  0xdc   : > { %v361_v13 = vpop.f32.mrf.mxu0 }
  0xdd   : > { %v362_v16 = vadd.f32 %v1487_v14, %v361_v13  ;;  %v426_v29 = vmax.f32 %v370_v26, 0.0 }
  0xde   : > { %v1126_v15 = vpop.f32.mrf.mxu0 }
  0xdf   : > { %v424_v20 = vmax.f32 %v362_v16, 0.0  ;;  %v373_v23 = vadd.f32 %v1126_v15, %v1487_v14  ;;  %v615_v15 = vld [vmem:[%s1659_s4 + $0x8] sm:$0xff] }
  0xe0   : > { %v364_v17 = vpop.f32.mrf.mxu0 }
  0xe1   : > { %v365_v18 = vadd.f32 %v1487_v14, %v364_v17  ;;  %v427_v27 = vmax.f32 %v373_v23, 0.0 }
  0xe2   : > { %v1129_v19 = vpop.f32.mrf.mxu0 }
  0xe3   : > { %v425_v21 = vmax.f32 %v365_v18, 0.0  ;;  %v441_v30 = vpack.c.bf16 %v427_v27, %v426_v29  ;;  %v386_v37 = vadd.f32 %v1129_v19, %v1487_v14 }
  0xe4   : > { %v377_v22 = vpop.f32.mrf.mxu0 }
  0xe5   : > { %v440_v24 = vpack.c.bf16 %v425_v21, %v424_v20  ;;  %v378_v31 = vadd.f32 %v1487_v14, %v377_v22  ;;  %v430_v42 = vmax.f32 %v386_v37, 0.0 }
  0xe6   : > { %v1130_v25 = vpop.f32.mrf.mxu0 }
  0xe7   : > { %1000 = vmatmul.mubr.msk.bf16.vlgmr.msra.gmra.mxu1 %vm460_vm1, %v440_v24  ;;  %v428_v34 = vmax.f32 %v378_v31, 0.0  ;;  %v389_v38 = vadd.f32 %v1130_v25, %v1487_v14 }
  0xe8   : > { %527 = vmatprep.mubr.bf16.mxu1 %v1259_v39  ;;  %1147 = vmatpush3.bf16.msra.mxu1 %v653_v47  ;;  %v380_v28 = vpop.f32.mrf.mxu0 }
  0xe9   : > { %1140 = vmatprep.subr.bf16.mxu1 %v660_v48  ;;  %v381_v32 = vadd.f32 %v1487_v14, %v380_v28  ;;  %v431_v43 = vmax.f32 %v389_v38, 0.0 }
  0xea   : > { %v1133_v33 = vpop.f32.mrf.mxu0 }
  0xeb   : > { %v429_v35 = vmax.f32 %v381_v32, 0.0  ;;  %v443_v45 = vpack.c.bf16 %v431_v43, %v430_v42  ;;  %v402_v52 = vadd.f32 %v1133_v33, %v1487_v14 }
  0xec   : > { %1148 = vmatpush3.bf16.msra.mxu1 %v652_v53  ;;  %v393_v36 = vpop.f32.mrf.mxu0 }
  0xed   : > { %1141 = vmatprep.subr.bf16.mxu1 %v659_v54  ;;  %v442_v40 = vpack.c.bf16 %v429_v35, %v428_v34  ;;  %v394_v46 = vadd.f32 %v1487_v14, %v393_v36  ;;  %v434_v56 = vmax.f32 %v402_v52, 0.0 }
  0xee   : > { %v1134_v41 = vpop.f32.mrf.mxu0 }
  0xef   : > { %1001 = vmatmul.mubr.msk.bf16.gmra.mxu1 %vm460_vm1, %v441_v30  ;;  %v432_v49 = vmax.f32 %v394_v46, 0.0  ;;  %v405_v53 = vadd.f32 %v1134_v41, %v1487_v14 }
  0xf0   : > { %537 = vmatprep.mubr.bf16.mxu1 %v1259_v39  ;;  %1149 = vmatpush3.bf16.msra.mxu1 %v651_v59  ;;  %v396_v44 = vpop.f32.mrf.mxu0 }
  0xf1   : > { %1142 = vmatprep.subr.bf16.mxu1 %v658_v60  ;;  %v397_v47 = vadd.f32 %v1487_v14, %v396_v44  ;;  %v435_v57 = vmax.f32 %v405_v53, 0.0 }
  0xf2   : > { %v1137_v48 = vpop.f32.mrf.mxu0 }
  0xf3   : > { %v433_v50 = vmax.f32 %v397_v47, 0.0  ;;  %v445_v59 = vpack.c.bf16 %v435_v57, %v434_v56  ;;  %v418_v0 = vadd.f32 %v1137_v48, %v1487_v14 }
  0xf4   : > { %1150 = vmatpush3.bf16.msra.mxu1 %v650_v1  ;;  %v409_v51 = vpop.f32.mrf.mxu0 }
  0xf5   : > { %1143 = vmatprep.subr.bf16.mxu1 %v657_v2  ;;  %v444_v54 = vpack.c.bf16 %v433_v50, %v432_v49  ;;  %v410_v60 = vadd.f32 %v1487_v14, %v409_v51  ;;  %v438_v3 = vmax.f32 %v418_v0, 0.0 }
  0xf6   : > { %v1138_v55 = vpop.f32.mrf.mxu0 }
  0xf7   : > { %1002 = vmatmul.mubr.msk.bf16.gmra.mxu1 %vm460_vm1, %v442_v40  ;;  %v436_v62 = vmax.f32 %v410_v60, 0.0  ;;  %v421_v1 = vadd.f32 %v1138_v55, %v1487_v14 }
  0xf8   : > { %547 = vmatprep.mubr.bf16.mxu1 %v1259_v39  ;;  %1151 = vmatpush3.bf16.msra.mxu1 %v649_v7  ;;  %v412_v58 = vpop.f32.mrf.mxu0  ;;  %v633_v7 = vld [vmem:[%s1659_s4 + $0x98] sm:$0xff] }
  0xf9   : > { %1144 = vmatprep.subr.bf16.mxu1 %v656_v8  ;;  %v413_v61 = vadd.f32 %v1487_v14, %v412_v58  ;;  %v439_v4 = vmax.f32 %v421_v1, 0.0  ;;  %v655_v8 = vpack.c.bf16 %v633_v7, %v632_v6  ;;  %v614_v14 = vld [vmem:[%s1659_s4] sm:$0xff] }
  0xfa   : > { %v646_v16 = vpack.c.bf16 %v615_v15, %v614_v14 }
  0xfb   : > { %v437_v63 = vmax.f32 %v413_v61, 0.0  ;;  %v447_v5 = vpack.c.bf16 %v439_v4, %v438_v3  ;;  %1069 = vmatprep.subr.bf16.mxu0 %v655_v8 }
  0xfc   : > { %1152 = vmatpush3.bf16.msra.mxu1 %v648_v11  ;;  %v630_v11 = vld [vmem:[%s1659_s4 + $0x80] sm:$0xff] }
  0xfd   : > { %v446_v2 = vpack.c.bf16 %v437_v63, %v436_v62  ;;  %1145 = vmatprep.subr.bf16.mxu1 %v655_v8  ;;  %v654_v13 = vpack.c.bf16 %v631_v12, %v630_v11 }
  0xff   : > { %1003 = vmatmul.mubr.msk.bf16.gmra.mxu1 %vm460_vm1, %v443_v45 }
 0x100   : > { %557 = vmatprep.mubr.bf16.mxu1 %v1259_v39 }
 0x107   : > { %1004 = vmatmul.mubr.msk.bf16.gmra.mxu1 %vm460_vm1, %v444_v54 }
 0x108   : > { %567 = vmatprep.mubr.bf16.mxu1 %v1259_v39 }
 0x10f   : > { %1005 = vmatmul.mubr.msk.bf16.gmra.mxu1 %vm460_vm1, %v445_v59 }
 0x110   : > { %577 = vmatprep.mubr.bf16.mxu1 %v1259_v39 }
 0x117   : > { %1006 = vmatmul.mubr.msk.bf16.gmra.mxu1 %vm460_vm1, %v446_v2 }
 0x118   : > { %587 = vmatprep.mubr.bf16.mxu1 %v1259_v39  ;;  %v617_v39 = vld [vmem:[%s1659_s4 + $0x18] sm:$0xff] }
 0x119   : > { %v647_v10 = vpack.c.bf16 %v617_v39, %v616_v9 }
 0x11b   : > { %1070 = vmatpush3.bf16.msra.mxu0 %v647_v10  ;;  %1153 = vmatpush3.bf16.msra.mxu1 %v647_v10 }
 0x11c   : > { %1071 = vmatprep.subr.bf16.mxu0 %v654_v13  ;;  %1146 = vmatprep.subr.bf16.mxu1 %v654_v13 }
 0x11f   : > { %1007 = vmatmul.mubr.msk.bf16.gmra.mxu1 %vm460_vm1, %v447_v5  ;;  %1072 = vmatpush3.bf16.msra.mxu0 %v646_v16 }
 0x120   : > { %1154 = vmatpush3.bf16.msra.mxu1 %v646_v16 }
 0x1a7   : > { %v519_v17 = vpop.f32.mrf.mxu1 }
 0x1a9   : > { %v521_v18 = vpop.f32.mrf.mxu1 }
 0x1aa   : > { %v1030_v19 = vpack.c.bf16 %v521_v18, %v519_v17 }
 0x1ab   : > { %v523_v20 = vpop.f32.mrf.mxu1 }
 0x1ac   : > { %839 = vst [vmem:[%s1547_s9] sm:$0xff] %v1030_v19  ;;  %v598_v24 = vpack.c.bf16 %v523_v20, %v519_v17 }
 0x1ad   : > { %v525_v21 = vpop.f32.mrf.mxu1 }
 0x1ae   : > { %v599_v22 = vpack.c.bf16 %v525_v21, %v521_v18  ;;  %v1031_v23 = vpack.c.bf16 %v525_v21, %v523_v20 }
 0x1af   : > { %v529_v25 = vpop.f32.mrf.mxu1 }
 0x1b0   : > { %840 = vst [vmem:[%s1547_s9 + $0x8] sm:$0xff] %v1031_v23  ;;  %694 = vmatprep.mubr.bf16.mxu0 %v599_v22 }
 0x1b1   : > { %v531_v26 = vpop.f32.mrf.mxu1  ;;  %695 = vmatmul.mubr.bf16.vlgmr.msra.gmra.mxu0 %v598_v24 }
 0x1b2   : > { %v1032_v27 = vpack.c.bf16 %v531_v26, %v529_v25 }
 0x1b3   : > { %v533_v28 = vpop.f32.mrf.mxu1 }
 0x1b4   : > { %841 = vst [vmem:[%s1547_s9 + $0x10] sm:$0xff] %v1032_v27  ;;  %v600_v32 = vpack.c.bf16 %v533_v28, %v529_v25 }
 0x1b5   : > { %v535_v29 = vpop.f32.mrf.mxu1 }
 0x1b6   : > { %v601_v30 = vpack.c.bf16 %v535_v29, %v531_v26  ;;  %v1033_v31 = vpack.c.bf16 %v535_v29, %v533_v28 }
 0x1b7   : > { %v539_v33 = vpop.f32.mrf.mxu1 }
 0x1b8   : > { %842 = vst [vmem:[%s1547_s9 + $0x18] sm:$0xff] %v1033_v31  ;;  %702 = vmatprep.mubr.bf16.mxu0 %v601_v30 }
 0x1b9   : > { %v541_v34 = vpop.f32.mrf.mxu1  ;;  %703 = vmatmul.mubr.bf16.gmra.mxu0 %v600_v32 }
 0x1ba   : > { %v1034_v35 = vpack.c.bf16 %v541_v34, %v539_v33 }
 0x1bb   : > { %v543_v36 = vpop.f32.mrf.mxu1 }
 0x1bc   : > { %843 = vst [vmem:[%s1547_s9 + $0x20] sm:$0xff] %v1034_v35  ;;  %v602_v41 = vpack.c.bf16 %v543_v36, %v539_v33 }
 0x1bd   : > { %v545_v37 = vpop.f32.mrf.mxu1 }
 0x1be   : > { %v603_v38 = vpack.c.bf16 %v545_v37, %v541_v34  ;;  %v1035_v40 = vpack.c.bf16 %v545_v37, %v543_v36 }
 0x1bf   : > { %v549_v42 = vpop.f32.mrf.mxu1 }
 0x1c0   : > { %844 = vst [vmem:[%s1547_s9 + $0x28] sm:$0xff] %v1035_v40  ;;  %710 = vmatprep.mubr.bf16.mxu0 %v603_v38 }
 0x1c1   : > { %v551_v43 = vpop.f32.mrf.mxu1  ;;  %711 = vmatmul.mubr.bf16.gmra.mxu0 %v602_v41 }
 0x1c2   : > { %v1036_v44 = vpack.c.bf16 %v551_v43, %v549_v42 }
 0x1c3   : > { %v553_v45 = vpop.f32.mrf.mxu1 }
 0x1c4   : > { %845 = vst [vmem:[%s1547_s9 + $0x30] sm:$0xff] %v1036_v44  ;;  %v604_v49 = vpack.c.bf16 %v553_v45, %v549_v42 }
 0x1c5   : > { %v555_v46 = vpop.f32.mrf.mxu1 }
 0x1c6   : > { %v605_v47 = vpack.c.bf16 %v555_v46, %v551_v43  ;;  %v1037_v48 = vpack.c.bf16 %v555_v46, %v553_v45 }
 0x1c7   : > { %v559_v50 = vpop.f32.mrf.mxu1 }
 0x1c8   : > { %846 = vst [vmem:[%s1547_s9 + $0x38] sm:$0xff] %v1037_v48  ;;  %718 = vmatprep.mubr.bf16.mxu0 %v605_v47 }
 0x1c9   : > { %v561_v51 = vpop.f32.mrf.mxu1  ;;  %719 = vmatmul.mubr.bf16.gmra.mxu0 %v604_v49 }
 0x1ca   : > { %v1038_v52 = vpack.c.bf16 %v561_v51, %v559_v50 }
 0x1cb   : > { %v563_v53 = vpop.f32.mrf.mxu1 }
 0x1cc   : > { %847 = vst [vmem:[%s1547_s9 + $0x40] sm:$0xff] %v1038_v52  ;;  %v606_v57 = vpack.c.bf16 %v563_v53, %v559_v50 }
 0x1cd   : > { %v565_v54 = vpop.f32.mrf.mxu1 }
 0x1ce   : > { %v607_v55 = vpack.c.bf16 %v565_v54, %v561_v51  ;;  %v1039_v56 = vpack.c.bf16 %v565_v54, %v563_v53 }
 0x1cf   : > { %v569_v58 = vpop.f32.mrf.mxu1 }
 0x1d0   : > { %848 = vst [vmem:[%s1547_s9 + $0x48] sm:$0xff] %v1039_v56  ;;  %726 = vmatprep.mubr.bf16.mxu0 %v607_v55 }
 0x1d1   : > { %v571_v59 = vpop.f32.mrf.mxu1  ;;  %727 = vmatmul.mubr.bf16.gmra.mxu0 %v606_v57 }
 0x1d2   : > { %v1040_v60 = vpack.c.bf16 %v571_v59, %v569_v58 }
 0x1d3   : > { %v573_v61 = vpop.f32.mrf.mxu1 }
 0x1d4   : > { %849 = vst [vmem:[%s1547_s9 + $0x50] sm:$0xff] %v1040_v60  ;;  %v608_v1 = vpack.c.bf16 %v573_v61, %v569_v58 }
 0x1d5   : > { %v575_v62 = vpop.f32.mrf.mxu1 }
 0x1d6   : > { %v609_v63 = vpack.c.bf16 %v575_v62, %v571_v59  ;;  %v1041_v0 = vpack.c.bf16 %v575_v62, %v573_v61 }
 0x1d7   : > { %v579_v2 = vpop.f32.mrf.mxu1 }
 0x1d8   : > { %850 = vst [vmem:[%s1547_s9 + $0x58] sm:$0xff] %v1041_v0  ;;  %734 = vmatprep.mubr.bf16.mxu0 %v609_v63 }
 0x1d9   : > { %v581_v3 = vpop.f32.mrf.mxu1  ;;  %735 = vmatmul.mubr.bf16.gmra.mxu0 %v608_v1 }
 0x1da   : > { %v1042_v4 = vpack.c.bf16 %v581_v3, %v579_v2 }
 0x1db   : > { %v583_v5 = vpop.f32.mrf.mxu1 }
 0x1dc   : > { %851 = vst [vmem:[%s1547_s9 + $0x60] sm:$0xff] %v1042_v4  ;;  %v610_v9 = vpack.c.bf16 %v583_v5, %v579_v2 }
 0x1dd   : > { %v585_v6 = vpop.f32.mrf.mxu1 }
 0x1de   : > { %v611_v7 = vpack.c.bf16 %v585_v6, %v581_v3  ;;  %v1043_v8 = vpack.c.bf16 %v585_v6, %v583_v5 }
 0x1df   : > { %v589_v39 = vpop.f32.mrf.mxu1 }
 0x1e0   : > { %852 = vst [vmem:[%s1547_s9 + $0x68] sm:$0xff] %v1043_v8  ;;  %742 = vmatprep.mubr.bf16.mxu0 %v611_v7 }
 0x1e1   : > { %v591_v10 = vpop.f32.mrf.mxu1  ;;  %743 = vmatmul.mubr.bf16.gmra.mxu0 %v610_v9 }
 0x1e2   : > { %v1044_v11 = vpack.c.bf16 %v591_v10, %v589_v39 }
 0x1e3   : > { %v593_v12 = vpop.f32.mrf.mxu1 }
 0x1e4   : > { %853 = vst [vmem:[%s1547_s9 + $0x70] sm:$0xff] %v1044_v11  ;;  %v612_v16 = vpack.c.bf16 %v593_v12, %v589_v39 }
 0x1e5   : > { %v595_v13 = vpop.f32.mrf.mxu1 }
 0x1e6   : > { %v613_v14 = vpack.c.bf16 %v595_v13, %v591_v10  ;;  %v1045_v15 = vpack.c.bf16 %v595_v13, %v593_v12 }
 0x1e8   : > { %854 = vst [vmem:[%s1547_s9 + $0x78] sm:$0xff] %v1045_v15  ;;  %750 = vmatprep.mubr.bf16.mxu1 %v613_v14 }
 0x1e9   : > { %751 = vmatmul.mubr.bf16.vlgmr.msra.gmra.mxu1 %v612_v16 }
 0x1ea   : > { %1210 = shalt.err (!%p1207_p3)
}
 0x1eb   : > { %s1211_s26 = scalar_lea.hbm %s1570_s16, 2048  ;;  %s1215_s9 = scalar_lea.hbm %s1660_s5, 4096 }
 0x1ec   : > { %p1212_p4 = scmp.ne.s32.totalorder %s1570_s16, %s1211_s26  ;;  %p1216_p9 = scmp.lt.s32.totalorder %s1570_s16, %s1660_s5 }
 0x1ed   : > { %p1217_p10 = scmp.lt.s32.totalorder %s1215_s9, %s1211_s26 }
 0x1ee   : > { %p1213_p7 = pnand %p1212_p4, %p1336_p5 }
 0x1ef   : > { %p1218_p11 = por %p1217_p10, %p1216_p9 }
 0x1f0   : > { %p1214_p8 = pneg %p1213_p7 }
 0x1f2   : > { %p1219_p12 = pnand %p1218_p11, %p1214_p8 }
 0x1f4   : > { %1222 = shalt.err (!%p1219_p12)
}
 0x1f5   : > { %s1261_s15 = smov 128   ;;  %s1262_s18 = smov 8  }
 0x1f6   : > { %1155 = dma.vmem_to_hbm [thread:$0]  (%p1336_p5), %s1572_s11, 2048, %s1570_s16, %s1576_s17, %s1261_s15, %s1261_s15, %s1262_s18  }
 0x1f7   : > { %s1604_s20 = scalar_lea.vmem %s1661_s6, %s988_s14 }
 0x271   : > { %v1073_v17 = vpop.f32.mrf.mxu0 }
 0x273   : > { %v1074_v18 = vpop.f32.mrf.mxu0 }
 0x274   : > { %v1075_v19 = vadd.f32 %v1074_v18, %v1073_v17 }
 0x275   : > { %v1076_v20 = vpop.f32.mrf.mxu0 }
 0x276   : > { %855 = vst.msk [vmem:[%s1604_s20] sm:$0xff] %vm302_vm0, %v1075_v19 }
 0x277   : > { %v1077_v21 = vpop.f32.mrf.mxu0 }
 0x278   : > { %v1078_v22 = vadd.f32 %v1077_v21, %v1076_v20 }
 0x279   : > { %v1079_v23 = vpop.f32.mrf.mxu0 }
 0x27a   : > { %856 = vst.msk [vmem:[%s1604_s20 + $0x8] sm:$0xff] %vm302_vm0, %v1078_v22 }
 0x27b   : > { %v1080_v24 = vpop.f32.mrf.mxu0 }
 0x27c   : > { %v1081_v25 = vadd.f32 %v1080_v24, %v1079_v23 }
 0x27d   : > { %v1082_v26 = vpop.f32.mrf.mxu0 }
 0x27e   : > { %857 = vst.msk [vmem:[%s1604_s20 + $0x10] sm:$0xff] %vm302_vm0, %v1081_v25 }
 0x27f   : > { %v1083_v27 = vpop.f32.mrf.mxu0 }
 0x280   : > { %v1084_v28 = vadd.f32 %v1083_v27, %v1082_v26 }
 0x281   : > { %v1085_v29 = vpop.f32.mrf.mxu0 }
 0x282   : > { %858 = vst.msk [vmem:[%s1604_s20 + $0x18] sm:$0xff] %vm302_vm0, %v1084_v28 }
 0x283   : > { %v1086_v30 = vpop.f32.mrf.mxu0 }
 0x284   : > { %v1087_v31 = vadd.f32 %v1086_v30, %v1085_v29 }
 0x285   : > { %v1088_v32 = vpop.f32.mrf.mxu0 }
 0x286   : > { %859 = vst.msk [vmem:[%s1604_s20 + $0x20] sm:$0xff] %vm302_vm0, %v1087_v31 }
 0x287   : > { %v1089_v33 = vpop.f32.mrf.mxu0 }
 0x288   : > { %v1090_v34 = vadd.f32 %v1089_v33, %v1088_v32 }
 0x289   : > { %v1091_v35 = vpop.f32.mrf.mxu0 }
 0x28a   : > { %860 = vst.msk [vmem:[%s1604_s20 + $0x28] sm:$0xff] %vm302_vm0, %v1090_v34 }
 0x28b   : > { %v1092_v36 = vpop.f32.mrf.mxu0 }
 0x28c   : > { %v1093_v37 = vadd.f32 %v1092_v36, %v1091_v35 }
 0x28d   : > { %v1094_v38 = vpop.f32.mrf.mxu0 }
 0x28e   : > { %861 = vst.msk [vmem:[%s1604_s20 + $0x30] sm:$0xff] %vm302_vm0, %v1093_v37 }
 0x28f   : > { %v1095_v40 = vpop.f32.mrf.mxu0 }
 0x290   : > { %v1096_v41 = vadd.f32 %v1095_v40, %v1094_v38 }
 0x291   : > { %v1097_v42 = vpop.f32.mrf.mxu0 }
 0x292   : > { %862 = vst.msk [vmem:[%s1604_s20 + $0x38] sm:$0xff] %vm302_vm0, %v1096_v41 }
 0x293   : > { %v1098_v43 = vpop.f32.mrf.mxu0 }
 0x294   : > { %v1099_v44 = vadd.f32 %v1098_v43, %v1097_v42 }
 0x295   : > { %v1100_v45 = vpop.f32.mrf.mxu0 }
 0x296   : > { %863 = vst.msk [vmem:[%s1604_s20 + $0x40] sm:$0xff] %vm302_vm0, %v1099_v44 }
 0x297   : > { %v1101_v46 = vpop.f32.mrf.mxu0 }
 0x298   : > { %v1102_v47 = vadd.f32 %v1101_v46, %v1100_v45 }
 0x299   : > { %v1103_v48 = vpop.f32.mrf.mxu0 }
 0x29a   : > { %864 = vst.msk [vmem:[%s1604_s20 + $0x48] sm:$0xff] %vm302_vm0, %v1102_v47 }
 0x29b   : > { %v1104_v49 = vpop.f32.mrf.mxu0 }
 0x29c   : > { %v1105_v50 = vadd.f32 %v1104_v49, %v1103_v48 }
 0x29d   : > { %v1106_v51 = vpop.f32.mrf.mxu0 }
 0x29e   : > { %865 = vst.msk [vmem:[%s1604_s20 + $0x50] sm:$0xff] %vm302_vm0, %v1105_v50 }
 0x29f   : > { %v1107_v52 = vpop.f32.mrf.mxu0 }
 0x2a0   : > { %v1108_v53 = vadd.f32 %v1107_v52, %v1106_v51 }
 0x2a1   : > { %v1109_v54 = vpop.f32.mrf.mxu0 }
 0x2a2   : > { %866 = vst.msk [vmem:[%s1604_s20 + $0x58] sm:$0xff] %vm302_vm0, %v1108_v53 }
 0x2a3   : > { %v1110_v55 = vpop.f32.mrf.mxu0 }
 0x2a4   : > { %v1111_v56 = vadd.f32 %v1110_v55, %v1109_v54 }
 0x2a5   : > { %v1112_v57 = vpop.f32.mrf.mxu0 }
 0x2a6   : > { %867 = vst.msk [vmem:[%s1604_s20 + $0x60] sm:$0xff] %vm302_vm0, %v1111_v56 }
 0x2a7   : > { %v1113_v58 = vpop.f32.mrf.mxu0 }
 0x2a8   : > { %v1114_v59 = vadd.f32 %v1113_v58, %v1112_v57 }
 0x2a9   : > { %v1115_v60 = vpop.f32.mrf.mxu1 }
 0x2aa   : > { %868 = vst.msk [vmem:[%s1604_s20 + $0x68] sm:$0xff] %vm302_vm0, %v1114_v59 }
 0x2ab   : > { %v1116_v61 = vpop.f32.mrf.mxu1 }
 0x2ac   : > { %v1117_v62 = vadd.f32 %v1116_v61, %v1115_v60 }
 0x2ad   : > { %v1118_v63 = vpop.f32.mrf.mxu1 }
 0x2ae   : > { %869 = vst.msk [vmem:[%s1604_s20 + $0x70] sm:$0xff] %vm302_vm0, %v1117_v62 }
 0x2af   : > { %v1119_v0 = vpop.f32.mrf.mxu1 }
 0x2b0   : > { %v1120_v1 = vadd.f32 %v1119_v0, %v1118_v63 }
 0x2b2   : > { %870 = vst.msk [vmem:[%s1604_s20 + $0x78] sm:$0xff] %vm302_vm0, %v1120_v1 }
 0x2b3 PF: > { %p1161_p5 = scmp.ge.s32.totalorder %s1257_s24, 2  ;;  %s910_s7 = sand.u32 1, %s1245_s21  }
 0x2b4   : > { %s911_s13 = scalar_lea.sflag [#allocation3], %s910_s7 }
 0x2b5   : > { %p1158_p13 = pnand %p1161_p5, %p1340_p6 }
 0x2b7   : > { %p1159_p0 = pneg %p1158_p13 }
 0x2b9   : > { %1240 = dma.done.wait (%p1159_p0), %s911_s13, 2048  }
 0x2ba   : > { %1242 = vsyncadd (%p1159_p0), %s911_s13, 4294965248  ;;  %p17_p1 = scmp.ge.s32.totalorder %s1323_s27, 4   ;;  %s1664_s21 = smov %s1249_s22 }
 0x2bb   : > { %s1665_s22 = smov %s1253_s23  ;;  %s1666_s23 = smov %s1334_s30 }
 0x2bc   : > { %s1667_s24 = smov %s1323_s27  ;;  %19 = sbr.rel (!%p17_p1) target bundleno = 3 (0x3), region = 87 }
 0x2c1   :  { %924 = vsyncpa [#allocation3], 1 }
 0x2c2   :  { %926 = vsyncpa [#allocation3 + $0x1], 1 }

</bundles_post_ra>
